<compile_context>
chip_gen: v6e
topology: v6e:2x2x1
jax: 0.10.0
libtpu: 0.0.40
codegen_flags: <defaults>
</compile_context>

<pallas_src>
import functools
import math

import jax
import jax.numpy as jnp
from jax import lax
from jax.experimental import pallas as pl
from jax.experimental.pallas import tpu as pltpu

ALPHA = 1.0
GAMMA = 2.0
_LANE = 128
_SUB = 8


def _focal_loss_kernel(x_ref, t_ref, out_ref, *, block_rows, lanes, rows_last,
                       alpha, gamma, binary_targets, fold):
    j = pl.program_id(1)  # reduction step within this split ("arbitrary")

    @pl.when(j == 0)
    def _init():
        out_ref[...] = jnp.zeros_like(out_ref)

    x = x_ref[...].astype(jnp.float32)
    t = t_ref[...].astype(jnp.float32)

    # Numerically stable BCE-with-logits; s = exp(-|x|) is reused for pt.
    s = jnp.exp(-jnp.abs(x))
    bce = jnp.maximum(x, 0.0) - x * t + jnp.log1p(s)

    if binary_targets:
        # pt = exp(-bce) == num / (1 + s) with num in {1, s} for t in {0, 1}:
        # saves a full exp per element (EUP is a single VLIW slot).
        num = jnp.where(jnp.logical_xor(x >= 0.0, t >= 0.5), s, 1.0)
        pt = num * pl.reciprocal(1.0 + s, approx=False)
    else:
        pt = jnp.exp(-bce)  # general (soft-target) fallback

    om = 1.0 - pt
    g = float(gamma)
    if g == 2.0:
        mod = om * om                      # default gamma: no pow / extra EUP
    elif g.is_integer() and g >= 0.0:
        mod = jnp.ones_like(om)
        for _ in range(int(g)):
            mod = mod * om
    else:
        # om can round to a tiny negative; clamp so pow (exp*log) stays finite.
        mod = jnp.maximum(om, 0.0) ** g
    focal = (alpha * mod) * bce

    def accumulate(val):
        if fold:
            # VPU-only sublane fold into the resident (8, lanes) accumulator.
            out_ref[...] += val.reshape(block_rows // _SUB, _SUB, lanes).sum(axis=0)
        else:
            # Small-R single-block case: accumulator has the block shape.
            out_ref[...] += val

    if rows_last < block_rows:
        # Only the globally-last block contains Pallas boundary padding rows;
        # gate the mask with pl.when so the hot path pays nothing.
        is_last = jnp.logical_and(pl.program_id(0) == pl.num_programs(0) - 1,
                                  j == pl.num_programs(1) - 1)

        @pl.when(is_last)
        def _masked():
            rows = lax.broadcasted_iota(jnp.int32, focal.shape, 0)
            accumulate(jnp.where(rows < rows_last, focal, 0.0))

        @pl.when(jnp.logical_not(is_last))
        def _unmasked():
            accumulate(focal)
    else:
        accumulate(focal)


def focal_loss(inputs, targets, *, alpha=ALPHA, gamma=GAMMA, reduction="mean",
               binary_targets=True, target_tile_bytes=4 << 20, n_splits=2):
    """Pallas TPU focal loss (BCE-with-logits based).

    inputs/targets: logits and targets of identical shape.  f32 or bf16 inputs
    are supported (bf16 halves HBM traffic of this streaming kernel; compute is
    always f32 inside).  `binary_targets=True` assumes targets in {0, 1}
    (multi-label classification) and uses a cheaper pt formulation; pass False
    for soft targets.
    """
    assert inputs.shape == targets.shape
    if reduction not in ("mean", "sum"):
        # TODO(synk): 'none' reduction (elementwise output) is a trivial variant
        # with out_specs matching in_specs; only 'mean'/'sum' wired here.
        raise NotImplementedError("only 'mean' and 'sum' reductions implemented")

    n_valid = math.prod(inputs.shape) if inputs.shape else 1

    # --- Canonicalize to 2D without whole-array pad / relayout copies. ---
    if inputs.ndim >= 2:
        C = inputs.shape[-1]
        R = n_valid // C
        x2 = inputs.reshape(R, C)      # collapse leading dims only
        t2 = targets.reshape(R, C)
    else:
        # 0-D / 1-D: lane-dense (rows, 128) slab; pad at most 127 elements with
        # a sentinel (x=80, t=1) whose focal contribution is exactly 0 in f32.
        pad = (-n_valid) % _LANE
        x1 = inputs.reshape(-1)
        t1 = targets.reshape(-1)
        if pad:
            x1 = jnp.pad(x1, (0, pad), constant_values=80.0)
            t1 = jnp.pad(t1, (0, pad), constant_values=1.0)
        C = _LANE
        R = (n_valid + pad) // _LANE
        x2 = x1.reshape(R, C)
        t2 = t1.reshape(R, C)

    x_item = jnp.dtype(x2.dtype).itemsize
    t_item = jnp.dtype(t2.dtype).itemsize
    min_item = max(1, min(x_item, t_item))
    max_item = max(x_item, t_item)
    lanes_pad = ((C + _LANE - 1) // _LANE) * _LANE
    row_align = max(_SUB, (4 // min_item) * _SUB)   # 8 (f32) / 16 (bf16) / 32 (int8)

    # --- Tile sizing: biggest row-block within the per-input byte budget. ---
    budget_rows = max(row_align,
                      (target_tile_bytes // (lanes_pad * max_item))
                      // row_align * row_align)
    if R >= row_align:
        block_rows = min(budget_rows, (R // row_align) * row_align)
        fold = True
    else:
        block_rows = R            # full-dim block (allowed); no sublane fold
        fold = False
    # TODO(synk): very wide rows (C*8*itemsize >> budget) would need lane
    # blocking as a second grid axis; not wired here.

    n_blocks = pl.cdiv(R, block_rows)
    rows_last = R - (n_blocks - 1) * block_rows     # static valid rows in last block

    # Leading "parallel" split axis (kept balanced by choosing a divisor).
    # TODO(synk): for guaranteed 2-TC sharding on v7x use CORE_PARALLEL/core_map.
    n_splits_eff = 1
    for d in range(max(1, min(n_splits, n_blocks)), 0, -1):
        if n_blocks % d == 0:
            n_splits_eff = d
            break
    blocks_per_split = n_blocks // n_splits_eff

    kernel = functools.partial(
        _focal_loss_kernel, block_rows=block_rows, lanes=C, rows_last=rows_last,
        alpha=float(alpha), gamma=float(gamma),
        binary_targets=bool(binary_targets), fold=fold)

    in_spec = pl.BlockSpec((block_rows, C),
                           lambda c, j: (c * blocks_per_split + j, 0))
    if fold:
        out_rows = n_splits_eff * _SUB
        out_spec = pl.BlockSpec((_SUB, C), lambda c, j: (c, 0))
    else:
        out_rows = block_rows
        out_spec = pl.BlockSpec((block_rows, C), lambda c, j: (0, 0))

    # VMEM budget: 2 double-buffered input tiles + output + slack.
    tile_bytes = block_rows * lanes_pad * (x_item + t_item)
    out_bytes = out_rows * lanes_pad * 4
    vmem_limit = int(max(32 << 20, 2 * tile_bytes + 2 * out_bytes + (4 << 20)))

    partials = pl.pallas_call(
        kernel,
        out_shape=jax.ShapeDtypeStruct((out_rows, C), jnp.float32),
        grid_spec=pltpu.PrefetchScalarGridSpec(
            num_scalar_prefetch=0,
            grid=(n_splits_eff, blocks_per_split),
            in_specs=[in_spec, in_spec],
            # Same (c, 0) block across the reduction axis -> resident accumulator.
            out_specs=out_spec,
        ),
        compiler_params=pltpu.CompilerParams(
            dimension_semantics=("parallel", "arbitrary"),
            vmem_limit_bytes=vmem_limit,
        ),
        cost_estimate=pl.CostEstimate(
            flops=14 * n_valid,
            transcendentals=(2 if binary_targets else 3) * n_valid,
            bytes_accessed=(x_item + t_item) * n_valid + out_bytes,
        ),
    )(x2, t2)

    total = jnp.sum(partials)   # tiny final reduce over the partial-sum block(s)
    if reduction == "mean":
        return total / n_valid
    return total


def _focal_loss_ref(inputs, targets, alpha=ALPHA, gamma=GAMMA, reduction="mean"):
    x = inputs.astype(jnp.float32)
    t = targets.astype(jnp.float32)
    bce = jnp.maximum(x, 0.0) - x * t + jnp.log1p(jnp.exp(-jnp.abs(x)))
    pt = jnp.exp(-bce)
    fl = alpha * (1.0 - pt) ** gamma * bce
    return jnp.mean(fl) if reduction == "mean" else jnp.sum(fl)


if __name__ == "__main__":
    key = jax.random.PRNGKey(0)
    k1, k2 = jax.random.split(key)

    def check(got, want, name):
        assert jnp.allclose(got, want, rtol=1e-4, atol=1e-6), (name, got, want)

    # 1) Typical multi-label problem: 16 samples x 128 classes (single block).
    B, C = 16, 128
    logits = jax.random.normal(k1, (B, C), dtype=jnp.float32) * 2.0
    targets = (jax.random.uniform(k2, (B, C)) > 0.5).astype(jnp.float32)
    loss = jax.block_until_ready(focal_loss(logits, targets))
    check(loss, _focal_loss_ref(logits, targets), "mean")
    check(focal_loss(logits, targets, reduction="sum"),
          _focal_loss_ref(logits, targets, reduction="sum"), "sum")

    # 2) Non-128 class count + multi-block accumulation + masked boundary block.
    B2, C2 = 70, 160
    logits2 = jax.random.normal(k1, (B2, C2), dtype=jnp.float32)
    targets2 = (jax.random.uniform(k2, (B2, C2)) > 0.7).astype(jnp.float32)
    loss2 = focal_loss(logits2, targets2, target_tile_bytes=16 * 256 * 4)
    check(loss2, _focal_loss_ref(logits2, targets2), "multi-block+mask")

    # 3) Even block count -> 2-way split ("parallel" leading grid axis).
    B3, C3 = 64, 160
    logits3 = jax.random.normal(k2, (B3, C3), dtype=jnp.float32)
    targets3 = (jax.random.uniform(k1, (B3, C3)) > 0.5).astype(jnp.float32)
    loss3 = focal_loss(logits3, targets3, target_tile_bytes=16 * 256 * 4)
    check(loss3, _focal_loss_ref(logits3, targets3), "two-split")

    # 4) Small, awkward shape (R < 8): full-dim block, no sublane fold.
    B4, C4 = 7, 37
    logits4 = jax.random.normal(k1, (B4, C4), dtype=jnp.float32)
    targets4 = (jax.random.uniform(k2, (B4, C4)) > 0.5).astype(jnp.float32)
    check(focal_loss(logits4, targets4), _focal_loss_ref(logits4, targets4), "small")

    # 5) bf16 inputs (half the HBM traffic; compute stays f32 in-kernel).
    logits5 = logits.astype(jnp.bfloat16)
    targets5 = targets.astype(jnp.bfloat16)
    check(focal_loss(logits5, targets5), _focal_loss_ref(logits5, targets5), "bf16")

    # 6) Non-default alpha/gamma and soft-target fallback path.
    check(focal_loss(logits, targets, alpha=0.25, gamma=1.5, binary_targets=False),
          _focal_loss_ref(logits, targets, alpha=0.25, gamma=1.5), "soft/gamma=1.5")

    print("KERNEL_OK")
</pallas_src>

<mosaic_0001>
module attributes {stable_mosaic.version = 11 : i64} {
  func.func @_focal_loss_kernel(%arg0: i32, %arg1: i32, %arg2: memref<16x128xf32, #tpu.memory_space<vmem>>, %arg3: memref<16x128xf32, #tpu.memory_space<vmem>>, %arg4: memref<8x128xf32, #tpu.memory_space<vmem>>) attributes {dimension_semantics = [#tpu.dimension_semantics<parallel>, #tpu.dimension_semantics<arbitrary>], iteration_bounds = array<i64: 1, 1>, scalar_prefetch = 0 : i64, scratch_operands = 0 : i64, tpu.core_type = #tpu.core_type<tc>, window_params = [{transform_indices = @transform_0, window_bounds = array<i64: 16, 128>}, {transform_indices = @transform_1, window_bounds = array<i64: 16, 128>}, {transform_indices = @transform_2, window_bounds = array<i64: 8, 128>}]} {
    %c0_i32 = arith.constant 0 : i32
    %0 = arith.cmpi eq, %arg1, %c0_i32 : i32
    %1 = arith.extui %0 : i1 to i32
    %c0_i32_0 = arith.constant 0 : i32
    %2 = arith.cmpi ne, %1, %c0_i32_0 : i32
    scf.if %2 {
      %cst_16 = arith.constant 0.000000e+00 : f32
      %37 = vector.broadcast %cst_16 : f32 to vector<8x128xf32>
      %c0_17 = arith.constant 0 : index
      %c0_18 = arith.constant 0 : index
      %38 = vector.load %arg4[%c0_17, %c0_18] : memref<8x128xf32, #tpu.memory_space<vmem>>, vector<8x128xf32>
      tpu.vector_store %arg4[%c0_17, %c0_18], %37 {strides = array<i32>} : memref<8x128xf32, #tpu.memory_space<vmem>>, vector<8x128xf32>,
    } else {
    }
    %c0 = arith.constant 0 : index
    %c0_1 = arith.constant 0 : index
    %3 = vector.load %arg2[%c0, %c0_1] : memref<16x128xf32, #tpu.memory_space<vmem>>, vector<16x128xf32>
    %c0_2 = arith.constant 0 : index
    %c0_3 = arith.constant 0 : index
    %4 = vector.load %arg3[%c0_2, %c0_3] : memref<16x128xf32, #tpu.memory_space<vmem>>, vector<16x128xf32>
    %5 = math.absf %3 : vector<16x128xf32>
    %cst = arith.constant 0.000000e+00 : f32
    %6 = vector.broadcast %cst : f32 to vector<16x128xf32>
    %7 = arith.subf %6, %5 : vector<16x128xf32>
    %8 = math.exp %7 : vector<16x128xf32>
    %cst_4 = arith.constant 0.000000e+00 : f32
    %9 = vector.broadcast %cst_4 : f32 to vector<16x128xf32>
    %10 = arith.maximumf %3, %9 : vector<16x128xf32>
    %11 = arith.mulf %3, %4 : vector<16x128xf32>
    %12 = arith.subf %10, %11 : vector<16x128xf32>
    %13 = math.log1p %8 : vector<16x128xf32>
    %14 = arith.addf %12, %13 : vector<16x128xf32>
    %cst_5 = arith.constant 0.000000e+00 : f32
    %15 = vector.broadcast %cst_5 : f32 to vector<16x128xf32>
    %16 = arith.cmpf oge, %3, %15 : vector<16x128xf32>
    %cst_6 = arith.constant 5.000000e-01 : f32
    %17 = vector.broadcast %cst_6 : f32 to vector<16x128xf32>
    %18 = arith.cmpf oge, %4, %17 : vector<16x128xf32>
    %19 = arith.xori %16, %18 : vector<16x128xi1>
    %cst_7 = arith.constant 1.000000e+00 : f32
    %20 = vector.broadcast %cst_7 : f32 to vector<16x128xf32>
    %21 = arith.select %19, %8, %20 : vector<16x128xi1>, vector<16x128xf32>
    %cst_8 = arith.constant 1.000000e+00 : f32
    %22 = vector.broadcast %cst_8 : f32 to vector<16x128xf32>
    %23 = arith.addf %22, %8 : vector<16x128xf32>
    %24 = tpu.reciprocal %23 : vector<16x128xf32> -> vector<16x128xf32>
    %25 = arith.mulf %21, %24 : vector<16x128xf32>
    %cst_9 = arith.constant 1.000000e+00 : f32
    %26 = vector.broadcast %cst_9 : f32 to vector<16x128xf32>
    %27 = arith.subf %26, %25 : vector<16x128xf32>
    %28 = arith.mulf %27, %27 : vector<16x128xf32>
    %cst_10 = arith.constant 1.000000e+00 : f32
    %29 = vector.broadcast %cst_10 : f32 to vector<16x128xf32>
    %30 = arith.mulf %29, %28 : vector<16x128xf32>
    %31 = arith.mulf %30, %14 : vector<16x128xf32>
    %c0_11 = arith.constant 0 : index
    %c0_12 = arith.constant 0 : index
    %32 = vector.load %arg4[%c0_11, %c0_12] : memref<8x128xf32, #tpu.memory_space<vmem>>, vector<8x128xf32>
    %33 = vector.shape_cast %31 : vector<16x128xf32> to vector<2x8x128xf32>
    %cst_13 = arith.constant dense<0.000000e+00> : vector<8x128xf32>
    %34 = vector.multi_reduction <add>, %33, %cst_13 [0] : vector<2x8x128xf32> to vector<8x128xf32>
    %35 = arith.addf %32, %34 : vector<8x128xf32>
    %c0_14 = arith.constant 0 : index
    %c0_15 = arith.constant 0 : index
    %36 = vector.load %arg4[%c0_14, %c0_15] : memref<8x128xf32, #tpu.memory_space<vmem>>, vector<8x128xf32>
    tpu.vector_store %arg4[%c0_14, %c0_15], %35 {strides = array<i32>} : memref<8x128xf32, #tpu.memory_space<vmem>>, vector<8x128xf32>,
    return
  }
  func.func @transform_0(%arg0: i32, %arg1: i32) -> (i32, i32) {
    %c1_i32 = arith.constant 1 : i32
    %0 = arith.muli %arg0, %c1_i32 : i32
    %1 = arith.addi %0, %arg1 : i32
    %c0_i32 = arith.constant 0 : i32
    %c0_i32_0 = arith.constant 0 : i32
    return %1, %c0_i32 : i32, i32
  }
  func.func @transform_1(%arg0: i32, %arg1: i32) -> (i32, i32) {
    %c1_i32 = arith.constant 1 : i32
    %0 = arith.muli %arg0, %c1_i32 : i32
    %1 = arith.addi %0, %arg1 : i32
    %c0_i32 = arith.constant 0 : i32
    %c0_i32_0 = arith.constant 0 : i32
    return %1, %c0_i32 : i32, i32
  }
  func.func @transform_2(%arg0: i32, %arg1: i32) -> (i32, i32) {
    %c0_i32 = arith.constant 0 : i32
    %c0_i32_0 = arith.constant 0 : i32
    return %arg0, %c0_i32 : i32, i32
  }
}

</mosaic_0001>

<bundles_post_ra>
// kernel: tpu_custom_call.1
= control target key start
LH: loop header
LB: loop body
LE: loop exit
PB: predicated region body
PF: predicated region fallthrough
CT: control target
= control target key end

     0   :  { %7 = vsyncpa [#allocation3], 0  ;;  %s266_s0 = inlined_call_operand.hbm [shape: f32[16,128], index: 0, kind: input, shape index: {}]   ;;  %s267_s1 = inlined_call_operand.hbm [shape: f32[16,128], index: 1, kind: input, shape index: {}]   ;;  %s268_s2 = inlined_call_operand.hbm [shape: f32[8,128], index: 2, kind: output, shape index: {}]  }
   0x1   :  { %8 = vsyncpa [#allocation6], 0 }
   0x2   :  { %9 = vsyncpa [#allocation4], 0  ;;  %s219_s9 = smov [#allocation2]  }
   0x3   :  { %s19_s10 = sshll.u32 %s219_s9, 4  ;;  %s20_s10 = int_to_ptr.vmem [resolvable:$true] %s19_s10 }
   0x4   :  { %s161_s11 = scalar_lea.vmem %s20_s10, 256  ;;  %p166_p1 = scmp.lt.s32.totalorder %s20_s10, %s20_s10 }
   0x5   :  { %p162_p0 = scmp.ne.s32.totalorder %s20_s10, %s161_s11  ;;  %p167_p2 = scmp.lt.s32.totalorder %s161_s11, %s161_s11 }
   0x7   :  { %p168_p3 = por %p167_p2, %p166_p1 }
   0x9   :  { %p169_p4 = pnand %p168_p3, %p162_p0 }
   0xb   :  { %172 = shalt.err (!%p169_p4)
}
   0xc   :  { %s220_s12 = smov 128   ;;  %s221_s13 = smov 8  }
   0xd   :  { %25 = dma.hbm_to_vmem [thread:$0]  %s266_s0, 256, %s20_s10, [#allocation3], %s220_s12, %s220_s12, %s221_s13  }
   0xe   :  { %s222_s16 = smov [#allocation5]  }
   0xf   :  { %s35_s17 = sshll.u32 %s222_s16, 4  ;;  %s36_s17 = int_to_ptr.vmem [resolvable:$true] %s35_s17 }
  0x10   :  { %s181_s18 = scalar_lea.vmem %s36_s17, 256  ;;  %p186_p6 = scmp.lt.s32.totalorder %s36_s17, %s36_s17 }
  0x11   :  { %p182_p5 = scmp.ne.s32.totalorder %s36_s17, %s181_s18  ;;  %p187_p7 = scmp.lt.s32.totalorder %s181_s18, %s181_s18 }
  0x13   :  { %p188_p8 = por %p187_p7, %p186_p6 }
  0x15   :  { %p189_p9 = pnand %p188_p8, %p182_p5 }
  0x17   :  { %192 = shalt.err (!%p189_p9)
}
  0x18   :  { %41 = dma.hbm_to_vmem [thread:$0]  %s267_s1, 256, %s36_s17, [#allocation6], %s220_s12, %s220_s12, %s221_s13  }
  0x19   :  { %213 = dma.done.wait [#allocation3], 256  }
  0x1a   :  { %214 = vsyncadd [#allocation3], 4294967040 }
  0x1b   :  { %215 = dma.done.wait [#allocation6], 256  }
  0x1c   :  { %216 = vsyncadd [#allocation6], 4294967040  ;;  %v57_v0 = vld [vmem:[#allocation2] sm:$0xff]  ;;  %v58_v1 = vld [vmem:[#allocation2 + $0x8] sm:$0xff]  ;;  %s223_s0 = smov [#allocation7]  }
  0x1d   :  { %v61_v2 = vand.u32 2147483647, %v57_v0  ;;  %v62_v3 = vand.u32 2147483647, %v58_v1  ;;  %v59_v12 = vld [vmem:[#allocation5] sm:$0xff]  ;;  %v60_v14 = vld [vmem:[#allocation5 + $0x8] sm:$0xff] }
  0x1e   :  { %vm95_vm0 = vcmp.ge.f32.partialorder %v57_v0, 0.0  ;;  %vm97_vm1 = vcmp.ge.f32.partialorder %v59_v12, 0.5  ;;  %vm96_vm2 = vcmp.ge.f32.partialorder %v58_v1, 0.0  ;;  %vm98_vm3 = vcmp.ge.f32.partialorder %v60_v14, 0.5  ;;  %s125_s1 = sshll.u32 %s223_s0, 4  ;;  %s126_s1 = int_to_ptr.vmem [resolvable:$true] %s125_s1 }
  0x1f   :  { %v63_v4 = vsub.f32 0.0, %v61_v2  ;;  %v64_v5 = vsub.f32 0.0, %v62_v3  ;;  %v69_v19 = vmax.f32 %v57_v0, 0.0  ;;  %v71_v20 = vmul.f32 %v59_v12, %v57_v0  ;;  %vm245_vm4 = vmxor %vm95_vm0, %vm97_vm1  ;;  %s193_s21 = scalar_lea.vmem %s126_s1, 128  ;;  %p198_p11 = scmp.lt.s32.totalorder %s126_s1, %s126_s1 }
  0x20   :  { %v70_v23 = vmax.f32 %v58_v1, 0.0  ;;  %v72_v24 = vmul.f32 %v60_v14, %v58_v1  ;;  %vm249_vm5 = vmxor %vm96_vm2, %vm98_vm3  ;;  %p194_p10 = scmp.ne.s32.totalorder %s126_s1, %s193_s21  ;;  %p199_p12 = scmp.lt.s32.totalorder %s193_s21, %s193_s21 }
  0x21   :  { %v65_v6 = vmul.f32 1.442695, %v63_v4  ;;  %v67_v7 = vmul.f32 1.442695, %v64_v5  ;;  %v73_v32 = vsub.f32 %v69_v19, %v71_v20 }
  0x22   :  { %v74_v36 = vsub.f32 %v70_v23, %v72_v24  ;;  %p200_p13 = por %p199_p12, %p198_p11 }
  0x23   :  { %141 = vpow2.f32 %v65_v6 }
  0x24   :  { %143 = vpow2.f32 %v67_v7  ;;  %p201_p0 = pnand %p200_p13, %p194_p10 }
  0x30   :  { %v142_v8 = vpop.eup %141 }
  0x31   :  { %v144_v9 = vpop.eup %143  ;;  %v75_v10 = vadd.f32 1.0, %v142_v8  ;;  %v78_v13 = vmul.f32 -0.5, %v142_v8  ;;  %v81_v17 = vand.u32 2147483647, %v142_v8  ;;  %v101_v30 = vsel %vm245_vm4, %v142_v8, 1.0 }
  0x32   :  { %v84_v11 = vadd.f32 1.0, %v144_v9  ;;  %v87_v15 = vmul.f32 -0.5, %v144_v9  ;;  %v90_v21 = vand.u32 2147483647, %v144_v9  ;;  %v102_v34 = vsel %vm249_vm5, %v144_v9, 1.0 }
  0x33   :  { %145 = vlog2.f32 %v75_v10  ;;  %v79_v16 = vadd.f32 1.0, %v78_v13  ;;  %vm253_vm6 = vcmp.lt.f32.partialorder %v81_v17, 0.0004427343 }
  0x34   :  { %147 = vlog2.f32 %v84_v11  ;;  %v88_v18 = vadd.f32 1.0, %v87_v15  ;;  %vm91_vm7 = vcmp.lt.f32.partialorder %v90_v21, 0.0004427343 }
  0x35   :  { %149 = vrcp.f32 %v75_v10  ;;  %v80_v26 = vmul.f32 %v142_v8, %v79_v16 }
  0x36   :  { %151 = vrcp.f32 %v84_v11  ;;  %v89_v29 = vmul.f32 %v144_v9, %v88_v18 }
  0x40   :  { %v146_v27 = vpop.eup %145 }
  0x41   :  { %v148_v31 = vpop.eup %147  ;;  %v77_v33 = vmul.f32 0.6931472, %v146_v27 }
  0x42   :  { %v150_v35 = vpop.eup %149  ;;  %v86_v37 = vmul.f32 0.6931472, %v148_v31 }
  0x43   :  { %v152_v38 = vpop.eup %151  ;;  %v83_v39 = vsel %vm253_vm6, %v80_v26, %v77_v33  ;;  %v107_v40 = vmul.f32 %v150_v35, %v101_v30 }
  0x44   :  { %v92_v41 = vsel %vm91_vm7, %v89_v29, %v86_v37  ;;  %v108_v42 = vmul.f32 %v152_v38, %v102_v34  ;;  %v93_v43 = vadd.f32 %v83_v39, %v73_v32 }
  0x45   :  { %v109_v44 = vsub.f32 1.0, %v107_v40  ;;  %v94_v45 = vadd.f32 %v92_v41, %v74_v36 }
  0x46   :  { %v110_v46 = vsub.f32 1.0, %v108_v42 }
  0x47   :  { %v111_v47 = vmul.f32 %v109_v44, %v109_v44 }
  0x48   :  { %v112_v48 = vmul.f32 %v110_v46, %v110_v46 }
  0x49   :  { %v113_v49 = vmul.f32 %v111_v47, %v93_v43 }
  0x4a   :  { %v114_v50 = vmul.f32 %v112_v48, %v94_v45 }
  0x4c   :  { %v116_v51 = vadd.f32 %v114_v50, %v113_v49 }
  0x4e   :  { %118 = vst [vmem:[#allocation7] sm:$0xff] %v116_v51 }
  0x4f   :  { %204 = shalt.err (!%p201_p0)
}
  0x50   :  { %128 = dma.vmem_to_hbm [thread:$0]  %s126_s1, 128, %s268_s2, [#allocation4]  }
  0x51   :  { %217 = dma.done.wait [#allocation4], 128  }
  0x52   :  { %218 = vsyncadd [#allocation4], 4294967168 }
  0x53   :  { %132 = vsyncpa [#allocation3], 1 }
  0x54   :  { %133 = vsyncpa [#allocation6], 1 }
  0x55   :  { %134 = vsyncpa [#allocation4], 1 }

</bundles_post_ra>
